<compile_context>
chip_gen: v7x
topology: tpu7x:2x2x1
jax: 0.10.0
libtpu: 0.0.40
codegen_flags: <defaults>
</compile_context>

<pallas_src>
import functools

import jax
import jax.numpy as jnp
from jax.experimental import pallas as pl
from jax.experimental.pallas import tpu as pltpu


def _lstm_mean_mlp_kernel(x_ref, len_ref, wih_ref, whh_ref, b_ref,
                          w1_ref, b1_ref, w2_ref, b2_ref, out_ref,
                          *, batch, seq_max_len, hidden_size):
    B, T, H = batch, seq_max_len, hidden_size

    # Input projection for ALL timesteps at once (off the serial h-chain).
    # x_ref is time-major flattened: row t*B + b == seq[b, t, :].
    gates_x = (jnp.dot(x_ref[...], wih_ref[...],
                       preferred_element_type=jnp.float32)
               + b_ref[...])                                    # (T*B, 4H)
    # TODO(synk): if T*B grows, stage gates_x in a pltpu.VMEM scratch and load
    # the (B, 4H) slice per step to keep vreg pressure flat.

    whh = whh_ref[...]                                          # (H, 4H), hoisted
    # TODO(synk): on v7x, pltpu.matmul_push_rhs(whh) once + matmul_acc_lhs/pop
    # per step would keep W_hh resident in the systolic array.

    # ---- hoisted loop-invariant broadcasts / masks (not re-emitted per step) --
    len_bh = jnp.broadcast_to(len_ref[...], (B, H))             # (B, H) int32
    lane = jax.lax.broadcasted_iota(jnp.int32, (B, 4 * H), 1)
    is_g_lane = (lane >= 2 * H) & (lane < 3 * H)                # tanh-gate lanes
    pre_scale = jnp.where(is_g_lane, 1.0, 0.5)                  # x/2 for sigmoid lanes

    h = jnp.zeros((B, H), jnp.float32)
    c = jnp.zeros((B, H), jnp.float32)
    acc = jnp.zeros((B, H), jnp.float32)

    # T is small & static -> fully unrolled recurrence; only h @ W_hh and the
    # gate nonlinearities sit on the serial dependency chain.
    for t in range(T):
        g = gates_x[t * B:(t + 1) * B, :] + jnp.dot(
            h, whh, preferred_element_type=jnp.float32)         # (B, 4H)

        # One full-width EUP pass: tanh(g/2) for sigmoid lanes, tanh(g) for the
        # candidate-gate lanes; sigmoid(x) = 0.5*(tanh(x/2) + 1).
        tt = jnp.tanh(g * pre_scale)                            # (B, 4H)
        act = jnp.where(is_g_lane, tt, 0.5 * tt + 0.5)          # (B, 4H)

        i_g = act[:, 0 * H:1 * H]
        f_g = act[:, 1 * H:2 * H]
        g_g = act[:, 2 * H:3 * H]
        o_g = act[:, 3 * H:4 * H]

        c_new = f_g * c + i_g * g_g
        h_new = o_g * jnp.tanh(c_new)                           # second EUP pass

        # packed-sequence semantics: state frozen past each sequence's length,
        # padded positions contribute 0 to the sum (mean is over max_length).
        m = len_bh > t                                          # (B, H) bool, int cmp
        h = jnp.where(m, h_new, h)
        c = jnp.where(m, c_new, c)
        acc = acc + jnp.where(m, h_new, 0.0)

    mean = acc * (1.0 / float(T))                               # mean over max_length
    y1 = jnp.dot(mean, w1_ref[...], preferred_element_type=jnp.float32) + b1_ref[...]
    y1 = jnp.where(y1 > 0, y1, 0.01 * y1)                       # LeakyReLU(0.01)
    # TODO(synk): Dropout treated as identity (eval-mode semantics).
    y2 = jnp.dot(y1, w2_ref[...], preferred_element_type=jnp.float32) + b2_ref[...]
    out_ref[...] = y2.astype(out_ref.dtype)


@jax.jit
def rnn_module_forward(seq, seq_len, params):
    """seq: (B, T, D) batch-first float32; seq_len: (B,) int32."""
    B, T, D = seq.shape
    H = params["w_hh"].shape[0]
    O = params["w2"].shape[1]

    # Pad batch to the sublane quantum so vregs / stores are full-width.
    B_pad = max(8, ((B + 7) // 8) * 8)
    pad = B_pad - B
    seq_p = jnp.pad(seq.astype(jnp.float32), ((0, pad), (0, 0), (0, 0)))
    len_p = jnp.pad(seq_len.astype(jnp.int32), ((0, pad),))     # padded rows: len 0

    # Time-major flatten (row t*B_pad + b): one MXU matmul for the whole input
    # projection + static sublane-aligned per-step slices inside the kernel.
    x_tm = jnp.swapaxes(seq_p, 0, 1).reshape(T * B_pad, D)
    len_col = len_p.reshape(B_pad, 1)                           # int32 (B, 1)

    kernel = functools.partial(_lstm_mean_mlp_kernel,
                               batch=B_pad, seq_max_len=T, hidden_size=H)

    vmem = pl.BlockSpec(memory_space=pltpu.MemorySpace.VMEM)
    out = pl.pallas_call(
        kernel,
        out_shape=jax.ShapeDtypeStruct((B_pad, O), jnp.float32),
        in_specs=[vmem] * 9,
        out_specs=vmem,
    )(x_tm, len_col,
      params["w_ih"], params["w_hh"], params["b"],
      params["w1"], params["b1"], params["w2"], params["b2"])
    # TODO(synk): if batch grows, add a parallel batch grid axis (>=8 rows per
    # block) so v7x's two TensorCores split the work; never split the T axis.
    return out[:B]


def reference_forward(seq, seq_len, params):
    """Pure-JAX reference mirroring the PyTorch module (eval mode)."""
    B, T, D = seq.shape
    H = params["w_hh"].shape[0]
    x_tbd = jnp.transpose(seq, (1, 0, 2)).astype(jnp.float32)
    t_idx = jnp.arange(T, dtype=jnp.int32)[:, None]
    mask = (t_idx < seq_len[None, :].astype(jnp.int32)).astype(jnp.float32)[:, :, None]

    def step(carry, inp):
        h, c = carry
        x, m = inp
        gates = x @ params["w_ih"] + h @ params["w_hh"] + params["b"]
        i = jax.nn.sigmoid(gates[:, 0 * H:1 * H])
        f = jax.nn.sigmoid(gates[:, 1 * H:2 * H])
        g = jnp.tanh(gates[:, 2 * H:3 * H])
        o = jax.nn.sigmoid(gates[:, 3 * H:4 * H])
        c_new = f * c + i * g
        h_new = o * jnp.tanh(c_new)
        h = jnp.where(m > 0, h_new, h)
        c = jnp.where(m > 0, c_new, c)
        return (h, c), h_new * m

    init = (jnp.zeros((B, H), jnp.float32), jnp.zeros((B, H), jnp.float32))
    _, outs = jax.lax.scan(step, init, (x_tbd, mask))
    mean = outs.sum(axis=0) / float(T)
    y1 = mean @ params["w1"] + params["b1"]
    y1 = jnp.where(y1 > 0, y1, 0.01 * y1)
    return y1 @ params["w2"] + params["b2"]


def make_params(key, in_size, hidden_size, fc_size, output):
    ks = jax.random.split(key, 7)
    s_ih = 1.0 / jnp.sqrt(in_size)
    s_hh = 1.0 / jnp.sqrt(hidden_size)
    s_fc = 1.0 / jnp.sqrt(fc_size)
    return {
        "w_ih": (jax.random.normal(ks[0], (in_size, 4 * hidden_size), jnp.float32) * s_ih),
        "w_hh": (jax.random.normal(ks[1], (hidden_size, 4 * hidden_size), jnp.float32) * s_hh),
        "b":    (jax.random.normal(ks[2], (1, 4 * hidden_size), jnp.float32) * 0.1),
        "w1":   (jax.random.normal(ks[3], (hidden_size, fc_size), jnp.float32) * s_hh),
        "b1":   (jax.random.normal(ks[4], (1, fc_size), jnp.float32) * 0.1),
        "w2":   (jax.random.normal(ks[5], (fc_size, output), jnp.float32) * s_fc),
        "b2":   (jax.random.normal(ks[6], (1, output), jnp.float32) * 0.1),
    }


if __name__ == "__main__":
    # Small shapes consistent with the module's forward:
    # batch=4, seq_max_len=8, in_size=64, hidden_size=32, fc_size=32, output=2
    B, T, D, H, F, O = 4, 8, 64, 32, 32, 2

    key = jax.random.PRNGKey(0)
    k_x, k_p = jax.random.split(key)
    seq = jax.random.normal(k_x, (B, T, D), jnp.float32)
    seq_len = jnp.array([8, 5, 3, 6], dtype=jnp.int32)
    params = make_params(k_p, D, H, F, O)

    out = rnn_module_forward(seq, seq_len, params)
    out = jax.block_until_ready(out)

    ref = jax.block_until_ready(reference_forward(seq, seq_len, params))
    assert out.shape == (B, O)
    assert jnp.allclose(out, ref, atol=1e-4, rtol=1e-4), (out, ref)

    print("KERNEL_OK")
</pallas_src>

<mosaic_0001>
module attributes {stable_mosaic.version = 11 : i64} {
  func.func @_lstm_mean_mlp_kernel(%arg0: memref<64x64xf32, #tpu.memory_space<vmem>>, %arg1: memref<8x1xi32, #tpu.memory_space<vmem>>, %arg2: memref<64x128xf32, #tpu.memory_space<vmem>>, %arg3: memref<32x128xf32, #tpu.memory_space<vmem>>, %arg4: memref<1x128xf32, #tpu.memory_space<vmem>>, %arg5: memref<32x32xf32, #tpu.memory_space<vmem>>, %arg6: memref<1x32xf32, #tpu.memory_space<vmem>>, %arg7: memref<32x2xf32, #tpu.memory_space<vmem>>, %arg8: memref<1x2xf32, #tpu.memory_space<vmem>>, %arg9: memref<8x2xf32, #tpu.memory_space<vmem>>) attributes {dimension_semantics = [], scalar_prefetch = 0 : i64, scratch_operands = 0 : i64, tpu.core_type = #tpu.core_type<tc>} {
    %c0 = arith.constant 0 : index
    %c0_0 = arith.constant 0 : index
    %0 = vector.load %arg0[%c0, %c0_0] : memref<64x64xf32, #tpu.memory_space<vmem>>, vector<64x64xf32>
    %c0_1 = arith.constant 0 : index
    %c0_2 = arith.constant 0 : index
    %1 = vector.load %arg2[%c0_1, %c0_2] : memref<64x128xf32, #tpu.memory_space<vmem>>, vector<64x128xf32>
    %cst = arith.constant dense<0.000000e+00> : vector<64x128xf32>
    %2 = tpu.matmul %0, %1, %cst {dimension_numbers = #tpu.dot_dimension_numbers<[1], [0], [0], [1], [0, 0, 1, 1], [], []>} : vector<64x64xf32>, vector<64x128xf32>, vector<64x128xf32> -> vector<64x128xf32>
    %c0_3 = arith.constant 0 : index
    %c0_4 = arith.constant 0 : index
    %3 = vector.load %arg4[%c0_3, %c0_4] : memref<1x128xf32, #tpu.memory_space<vmem>>, vector<1x128xf32>
    %4 = vector.broadcast %3 : vector<1x128xf32> to vector<64x128xf32>
    %5 = arith.addf %2, %4 : vector<64x128xf32>
    %c0_5 = arith.constant 0 : index
    %c0_6 = arith.constant 0 : index
    %6 = vector.load %arg3[%c0_5, %c0_6] : memref<32x128xf32, #tpu.memory_space<vmem>>, vector<32x128xf32>
    %c0_7 = arith.constant 0 : index
    %c0_8 = arith.constant 0 : index
    %7 = vector.load %arg1[%c0_7, %c0_8] : memref<8x1xi32, #tpu.memory_space<vmem>>, vector<8x1xi32>
    %8 = vector.shape_cast %7 : vector<8x1xi32> to vector<8x1xi32>
    %9 = vector.broadcast %8 : vector<8x1xi32> to vector<8x32xi32>
    %10 = tpu.iota {dimensions = array<i32: 1>} : vector<8x128xi32>
    %c64_i32 = arith.constant 64 : i32
    %11 = vector.broadcast %c64_i32 : i32 to vector<8x128xi32>
    %12 = arith.cmpi sge, %10, %11 : vector<8x128xi32>
    %c96_i32 = arith.constant 96 : i32
    %13 = vector.broadcast %c96_i32 : i32 to vector<8x128xi32>
    %14 = arith.cmpi slt, %10, %13 : vector<8x128xi32>
    %15 = arith.andi %12, %14 : vector<8x128xi1>
    %cst_9 = arith.constant 1.000000e+00 : f32
    %cst_10 = arith.constant 5.000000e-01 : f32
    %16 = vector.broadcast %cst_9 : f32 to vector<8x128xf32>
    %17 = vector.broadcast %cst_10 : f32 to vector<8x128xf32>
    %18 = arith.select %15, %16, %17 : vector<8x128xi1>, vector<8x128xf32>
    %cst_11 = arith.constant 0.000000e+00 : f32
    %19 = vector.broadcast %cst_11 : f32 to vector<8x32xf32>
    %cst_12 = arith.constant 0.000000e+00 : f32
    %20 = vector.broadcast %cst_12 : f32 to vector<8x32xf32>
    %cst_13 = arith.constant 0.000000e+00 : f32
    %21 = vector.broadcast %cst_13 : f32 to vector<8x32xf32>
    %22 = vector.extract_strided_slice %5 {offsets = [0, 0], sizes = [8, 128], strides = [1, 1]} : vector<64x128xf32> to vector<8x128xf32>
    %cst_14 = arith.constant dense<0.000000e+00> : vector<8x128xf32>
    %23 = tpu.matmul %19, %6, %cst_14 {dimension_numbers = #tpu.dot_dimension_numbers<[1], [0], [0], [1], [0, 0, 1, 1], [], []>} : vector<8x32xf32>, vector<32x128xf32>, vector<8x128xf32> -> vector<8x128xf32>
    %24 = arith.addf %22, %23 : vector<8x128xf32>
    %25 = arith.mulf %24, %18 : vector<8x128xf32>
    %26 = math.tanh %25 : vector<8x128xf32>
    %cst_15 = arith.constant 5.000000e-01 : f32
    %27 = vector.broadcast %cst_15 : f32 to vector<8x128xf32>
    %28 = arith.mulf %27, %26 : vector<8x128xf32>
    %cst_16 = arith.constant 5.000000e-01 : f32
    %29 = vector.broadcast %cst_16 : f32 to vector<8x128xf32>
    %30 = arith.addf %28, %29 : vector<8x128xf32>
    %31 = arith.select %15, %26, %30 : vector<8x128xi1>, vector<8x128xf32>
    %32 = vector.extract_strided_slice %31 {offsets = [0, 0], sizes = [8, 32], strides = [1, 1]} : vector<8x128xf32> to vector<8x32xf32>
    %33 = vector.extract_strided_slice %31 {offsets = [0, 32], sizes = [8, 32], strides = [1, 1]} : vector<8x128xf32> to vector<8x32xf32>
    %34 = vector.extract_strided_slice %31 {offsets = [0, 64], sizes = [8, 32], strides = [1, 1]} : vector<8x128xf32> to vector<8x32xf32>
    %35 = vector.extract_strided_slice %31 {offsets = [0, 96], sizes = [8, 32], strides = [1, 1]} : vector<8x128xf32> to vector<8x32xf32>
    %36 = arith.mulf %33, %20 : vector<8x32xf32>
    %37 = arith.mulf %32, %34 : vector<8x32xf32>
    %38 = arith.addf %36, %37 : vector<8x32xf32>
    %39 = math.tanh %38 : vector<8x32xf32>
    %40 = arith.mulf %35, %39 : vector<8x32xf32>
    %c0_i32 = arith.constant 0 : i32
    %41 = vector.broadcast %c0_i32 : i32 to vector<8x32xi32>
    %42 = arith.cmpi sgt, %9, %41 : vector<8x32xi32>
    %43 = arith.select %42, %40, %19 : vector<8x32xi1>, vector<8x32xf32>
    %44 = arith.select %42, %38, %20 : vector<8x32xi1>, vector<8x32xf32>
    %cst_17 = arith.constant 0.000000e+00 : f32
    %45 = vector.broadcast %cst_17 : f32 to vector<8x32xf32>
    %46 = arith.select %42, %40, %45 : vector<8x32xi1>, vector<8x32xf32>
    %47 = arith.addf %21, %46 : vector<8x32xf32>
    %48 = vector.extract_strided_slice %5 {offsets = [8, 0], sizes = [8, 128], strides = [1, 1]} : vector<64x128xf32> to vector<8x128xf32>
    %cst_18 = arith.constant dense<0.000000e+00> : vector<8x128xf32>
    %49 = tpu.matmul %43, %6, %cst_18 {dimension_numbers = #tpu.dot_dimension_numbers<[1], [0], [0], [1], [0, 0, 1, 1], [], []>} : vector<8x32xf32>, vector<32x128xf32>, vector<8x128xf32> -> vector<8x128xf32>
    %50 = arith.addf %48, %49 : vector<8x128xf32>
    %51 = arith.mulf %50, %18 : vector<8x128xf32>
    %52 = math.tanh %51 : vector<8x128xf32>
    %cst_19 = arith.constant 5.000000e-01 : f32
    %53 = vector.broadcast %cst_19 : f32 to vector<8x128xf32>
    %54 = arith.mulf %53, %52 : vector<8x128xf32>
    %cst_20 = arith.constant 5.000000e-01 : f32
    %55 = vector.broadcast %cst_20 : f32 to vector<8x128xf32>
    %56 = arith.addf %54, %55 : vector<8x128xf32>
    %57 = arith.select %15, %52, %56 : vector<8x128xi1>, vector<8x128xf32>
    %58 = vector.extract_strided_slice %57 {offsets = [0, 0], sizes = [8, 32], strides = [1, 1]} : vector<8x128xf32> to vector<8x32xf32>
    %59 = vector.extract_strided_slice %57 {offsets = [0, 32], sizes = [8, 32], strides = [1, 1]} : vector<8x128xf32> to vector<8x32xf32>
    %60 = vector.extract_strided_slice %57 {offsets = [0, 64], sizes = [8, 32], strides = [1, 1]} : vector<8x128xf32> to vector<8x32xf32>
    %61 = vector.extract_strided_slice %57 {offsets = [0, 96], sizes = [8, 32], strides = [1, 1]} : vector<8x128xf32> to vector<8x32xf32>
    %62 = arith.mulf %59, %44 : vector<8x32xf32>
    %63 = arith.mulf %58, %60 : vector<8x32xf32>
    %64 = arith.addf %62, %63 : vector<8x32xf32>
    %65 = math.tanh %64 : vector<8x32xf32>
    %66 = arith.mulf %61, %65 : vector<8x32xf32>
    %c1_i32 = arith.constant 1 : i32
    %67 = vector.broadcast %c1_i32 : i32 to vector<8x32xi32>
    %68 = arith.cmpi sgt, %9, %67 : vector<8x32xi32>
    %69 = arith.select %68, %66, %43 : vector<8x32xi1>, vector<8x32xf32>
    %70 = arith.select %68, %64, %44 : vector<8x32xi1>, vector<8x32xf32>
    %cst_21 = arith.constant 0.000000e+00 : f32
    %71 = vector.broadcast %cst_21 : f32 to vector<8x32xf32>
    %72 = arith.select %68, %66, %71 : vector<8x32xi1>, vector<8x32xf32>
    %73 = arith.addf %47, %72 : vector<8x32xf32>
    %74 = vector.extract_strided_slice %5 {offsets = [16, 0], sizes = [8, 128], strides = [1, 1]} : vector<64x128xf32> to vector<8x128xf32>
    %cst_22 = arith.constant dense<0.000000e+00> : vector<8x128xf32>
    %75 = tpu.matmul %69, %6, %cst_22 {dimension_numbers = #tpu.dot_dimension_numbers<[1], [0], [0], [1], [0, 0, 1, 1], [], []>} : vector<8x32xf32>, vector<32x128xf32>, vector<8x128xf32> -> vector<8x128xf32>
    %76 = arith.addf %74, %75 : vector<8x128xf32>
    %77 = arith.mulf %76, %18 : vector<8x128xf32>
    %78 = math.tanh %77 : vector<8x128xf32>
    %cst_23 = arith.constant 5.000000e-01 : f32
    %79 = vector.broadcast %cst_23 : f32 to vector<8x128xf32>
    %80 = arith.mulf %79, %78 : vector<8x128xf32>
    %cst_24 = arith.constant 5.000000e-01 : f32
    %81 = vector.broadcast %cst_24 : f32 to vector<8x128xf32>
    %82 = arith.addf %80, %81 : vector<8x128xf32>
    %83 = arith.select %15, %78, %82 : vector<8x128xi1>, vector<8x128xf32>
    %84 = vector.extract_strided_slice %83 {offsets = [0, 0], sizes = [8, 32], strides = [1, 1]} : vector<8x128xf32> to vector<8x32xf32>
    %85 = vector.extract_strided_slice %83 {offsets = [0, 32], sizes = [8, 32], strides = [1, 1]} : vector<8x128xf32> to vector<8x32xf32>
    %86 = vector.extract_strided_slice %83 {offsets = [0, 64], sizes = [8, 32], strides = [1, 1]} : vector<8x128xf32> to vector<8x32xf32>
    %87 = vector.extract_strided_slice %83 {offsets = [0, 96], sizes = [8, 32], strides = [1, 1]} : vector<8x128xf32> to vector<8x32xf32>
    %88 = arith.mulf %85, %70 : vector<8x32xf32>
    %89 = arith.mulf %84, %86 : vector<8x32xf32>
    %90 = arith.addf %88, %89 : vector<8x32xf32>
    %91 = math.tanh %90 : vector<8x32xf32>
    %92 = arith.mulf %87, %91 : vector<8x32xf32>
    %c2_i32 = arith.constant 2 : i32
    %93 = vector.broadcast %c2_i32 : i32 to vector<8x32xi32>
    %94 = arith.cmpi sgt, %9, %93 : vector<8x32xi32>
    %95 = arith.select %94, %92, %69 : vector<8x32xi1>, vector<8x32xf32>
    %96 = arith.select %94, %90, %70 : vector<8x32xi1>, vector<8x32xf32>
    %cst_25 = arith.constant 0.000000e+00 : f32
    %97 = vector.broadcast %cst_25 : f32 to vector<8x32xf32>
    %98 = arith.select %94, %92, %97 : vector<8x32xi1>, vector<8x32xf32>
    %99 = arith.addf %73, %98 : vector<8x32xf32>
    %100 = vector.extract_strided_slice %5 {offsets = [24, 0], sizes = [8, 128], strides = [1, 1]} : vector<64x128xf32> to vector<8x128xf32>
    %cst_26 = arith.constant dense<0.000000e+00> : vector<8x128xf32>
    %101 = tpu.matmul %95, %6, %cst_26 {dimension_numbers = #tpu.dot_dimension_numbers<[1], [0], [0], [1], [0, 0, 1, 1], [], []>} : vector<8x32xf32>, vector<32x128xf32>, vector<8x128xf32> -> vector<8x128xf32>
    %102 = arith.addf %100, %101 : vector<8x128xf32>
    %103 = arith.mulf %102, %18 : vector<8x128xf32>
    %104 = math.tanh %103 : vector<8x128xf32>
    %cst_27 = arith.constant 5.000000e-01 : f32
    %105 = vector.broadcast %cst_27 : f32 to vector<8x128xf32>
    %106 = arith.mulf %105, %104 : vector<8x128xf32>
    %cst_28 = arith.constant 5.000000e-01 : f32
    %107 = vector.broadcast %cst_28 : f32 to vector<8x128xf32>
    %108 = arith.addf %106, %107 : vector<8x128xf32>
    %109 = arith.select %15, %104, %108 : vector<8x128xi1>, vector<8x128xf32>
    %110 = vector.extract_strided_slice %109 {offsets = [0, 0], sizes = [8, 32], strides = [1, 1]} : vector<8x128xf32> to vector<8x32xf32>
    %111 = vector.extract_strided_slice %109 {offsets = [0, 32], sizes = [8, 32], strides = [1, 1]} : vector<8x128xf32> to vector<8x32xf32>
    %112 = vector.extract_strided_slice %109 {offsets = [0, 64], sizes = [8, 32], strides = [1, 1]} : vector<8x128xf32> to vector<8x32xf32>
    %113 = vector.extract_strided_slice %109 {offsets = [0, 96], sizes = [8, 32], strides = [1, 1]} : vector<8x128xf32> to vector<8x32xf32>
    %114 = arith.mulf %111, %96 : vector<8x32xf32>
    %115 = arith.mulf %110, %112 : vector<8x32xf32>
    %116 = arith.addf %114, %115 : vector<8x32xf32>
    %117 = math.tanh %116 : vector<8x32xf32>
    %118 = arith.mulf %113, %117 : vector<8x32xf32>
    %c3_i32 = arith.constant 3 : i32
    %119 = vector.broadcast %c3_i32 : i32 to vector<8x32xi32>
    %120 = arith.cmpi sgt, %9, %119 : vector<8x32xi32>
    %121 = arith.select %120, %118, %95 : vector<8x32xi1>, vector<8x32xf32>
    %122 = arith.select %120, %116, %96 : vector<8x32xi1>, vector<8x32xf32>
    %cst_29 = arith.constant 0.000000e+00 : f32
    %123 = vector.broadcast %cst_29 : f32 to vector<8x32xf32>
    %124 = arith.select %120, %118, %123 : vector<8x32xi1>, vector<8x32xf32>
    %125 = arith.addf %99, %124 : vector<8x32xf32>
    %126 = vector.extract_strided_slice %5 {offsets = [32, 0], sizes = [8, 128], strides = [1, 1]} : vector<64x128xf32> to vector<8x128xf32>
    %cst_30 = arith.constant dense<0.000000e+00> : vector<8x128xf32>
    %127 = tpu.matmul %121, %6, %cst_30 {dimension_numbers = #tpu.dot_dimension_numbers<[1], [0], [0], [1], [0, 0, 1, 1], [], []>} : vector<8x32xf32>, vector<32x128xf32>, vector<8x128xf32> -> vector<8x128xf32>
    %128 = arith.addf %126, %127 : vector<8x128xf32>
    %129 = arith.mulf %128, %18 : vector<8x128xf32>
    %130 = math.tanh %129 : vector<8x128xf32>
    %cst_31 = arith.constant 5.000000e-01 : f32
    %131 = vector.broadcast %cst_31 : f32 to vector<8x128xf32>
    %132 = arith.mulf %131, %130 : vector<8x128xf32>
    %cst_32 = arith.constant 5.000000e-01 : f32
    %133 = vector.broadcast %cst_32 : f32 to vector<8x128xf32>
    %134 = arith.addf %132, %133 : vector<8x128xf32>
    %135 = arith.select %15, %130, %134 : vector<8x128xi1>, vector<8x128xf32>
    %136 = vector.extract_strided_slice %135 {offsets = [0, 0], sizes = [8, 32], strides = [1, 1]} : vector<8x128xf32> to vector<8x32xf32>
    %137 = vector.extract_strided_slice %135 {offsets = [0, 32], sizes = [8, 32], strides = [1, 1]} : vector<8x128xf32> to vector<8x32xf32>
    %138 = vector.extract_strided_slice %135 {offsets = [0, 64], sizes = [8, 32], strides = [1, 1]} : vector<8x128xf32> to vector<8x32xf32>
    %139 = vector.extract_strided_slice %135 {offsets = [0, 96], sizes = [8, 32], strides = [1, 1]} : vector<8x128xf32> to vector<8x32xf32>
    %140 = arith.mulf %137, %122 : vector<8x32xf32>
    %141 = arith.mulf %136, %138 : vector<8x32xf32>
    %142 = arith.addf %140, %141 : vector<8x32xf32>
    %143 = math.tanh %142 : vector<8x32xf32>
    %144 = arith.mulf %139, %143 : vector<8x32xf32>
    %c4_i32 = arith.constant 4 : i32
    %145 = vector.broadcast %c4_i32 : i32 to vector<8x32xi32>
    %146 = arith.cmpi sgt, %9, %145 : vector<8x32xi32>
    %147 = arith.select %146, %144, %121 : vector<8x32xi1>, vector<8x32xf32>
    %148 = arith.select %146, %142, %122 : vector<8x32xi1>, vector<8x32xf32>
    %cst_33 = arith.constant 0.000000e+00 : f32
    %149 = vector.broadcast %cst_33 : f32 to vector<8x32xf32>
    %150 = arith.select %146, %144, %149 : vector<8x32xi1>, vector<8x32xf32>
    %151 = arith.addf %125, %150 : vector<8x32xf32>
    %152 = vector.extract_strided_slice %5 {offsets = [40, 0], sizes = [8, 128], strides = [1, 1]} : vector<64x128xf32> to vector<8x128xf32>
    %cst_34 = arith.constant dense<0.000000e+00> : vector<8x128xf32>
    %153 = tpu.matmul %147, %6, %cst_34 {dimension_numbers = #tpu.dot_dimension_numbers<[1], [0], [0], [1], [0, 0, 1, 1], [], []>} : vector<8x32xf32>, vector<32x128xf32>, vector<8x128xf32> -> vector<8x128xf32>
    %154 = arith.addf %152, %153 : vector<8x128xf32>
    %155 = arith.mulf %154, %18 : vector<8x128xf32>
    %156 = math.tanh %155 : vector<8x128xf32>
    %cst_35 = arith.constant 5.000000e-01 : f32
    %157 = vector.broadcast %cst_35 : f32 to vector<8x128xf32>
    %158 = arith.mulf %157, %156 : vector<8x128xf32>
    %cst_36 = arith.constant 5.000000e-01 : f32
    %159 = vector.broadcast %cst_36 : f32 to vector<8x128xf32>
    %160 = arith.addf %158, %159 : vector<8x128xf32>
    %161 = arith.select %15, %156, %160 : vector<8x128xi1>, vector<8x128xf32>
    %162 = vector.extract_strided_slice %161 {offsets = [0, 0], sizes = [8, 32], strides = [1, 1]} : vector<8x128xf32> to vector<8x32xf32>
    %163 = vector.extract_strided_slice %161 {offsets = [0, 32], sizes = [8, 32], strides = [1, 1]} : vector<8x128xf32> to vector<8x32xf32>
    %164 = vector.extract_strided_slice %161 {offsets = [0, 64], sizes = [8, 32], strides = [1, 1]} : vector<8x128xf32> to vector<8x32xf32>
    %165 = vector.extract_strided_slice %161 {offsets = [0, 96], sizes = [8, 32], strides = [1, 1]} : vector<8x128xf32> to vector<8x32xf32>
    %166 = arith.mulf %163, %148 : vector<8x32xf32>
    %167 = arith.mulf %162, %164 : vector<8x32xf32>
    %168 = arith.addf %166, %167 : vector<8x32xf32>
    %169 = math.tanh %168 : vector<8x32xf32>
    %170 = arith.mulf %165, %169 : vector<8x32xf32>
    %c5_i32 = arith.constant 5 : i32
    %171 = vector.broadcast %c5_i32 : i32 to vector<8x32xi32>
    %172 = arith.cmpi sgt, %9, %171 : vector<8x32xi32>
    %173 = arith.select %172, %170, %147 : vector<8x32xi1>, vector<8x32xf32>
    %174 = arith.select %172, %168, %148 : vector<8x32xi1>, vector<8x32xf32>
    %cst_37 = arith.constant 0.000000e+00 : f32
    %175 = vector.broadcast %cst_37 : f32 to vector<8x32xf32>
    %176 = arith.select %172, %170, %175 : vector<8x32xi1>, vector<8x32xf32>
    %177 = arith.addf %151, %176 : vector<8x32xf32>
    %178 = vector.extract_strided_slice %5 {offsets = [48, 0], sizes = [8, 128], strides = [1, 1]} : vector<64x128xf32> to vector<8x128xf32>
    %cst_38 = arith.constant dense<0.000000e+00> : vector<8x128xf32>
    %179 = tpu.matmul %173, %6, %cst_38 {dimension_numbers = #tpu.dot_dimension_numbers<[1], [0], [0], [1], [0, 0, 1, 1], [], []>} : vector<8x32xf32>, vector<32x128xf32>, vector<8x128xf32> -> vector<8x128xf32>
    %180 = arith.addf %178, %179 : vector<8x128xf32>
    %181 = arith.mulf %180, %18 : vector<8x128xf32>
    %182 = math.tanh %181 : vector<8x128xf32>
    %cst_39 = arith.constant 5.000000e-01 : f32
    %183 = vector.broadcast %cst_39 : f32 to vector<8x128xf32>
    %184 = arith.mulf %183, %182 : vector<8x128xf32>
    %cst_40 = arith.constant 5.000000e-01 : f32
    %185 = vector.broadcast %cst_40 : f32 to vector<8x128xf32>
    %186 = arith.addf %184, %185 : vector<8x128xf32>
    %187 = arith.select %15, %182, %186 : vector<8x128xi1>, vector<8x128xf32>
    %188 = vector.extract_strided_slice %187 {offsets = [0, 0], sizes = [8, 32], strides = [1, 1]} : vector<8x128xf32> to vector<8x32xf32>
    %189 = vector.extract_strided_slice %187 {offsets = [0, 32], sizes = [8, 32], strides = [1, 1]} : vector<8x128xf32> to vector<8x32xf32>
    %190 = vector.extract_strided_slice %187 {offsets = [0, 64], sizes = [8, 32], strides = [1, 1]} : vector<8x128xf32> to vector<8x32xf32>
    %191 = vector.extract_strided_slice %187 {offsets = [0, 96], sizes = [8, 32], strides = [1, 1]} : vector<8x128xf32> to vector<8x32xf32>
    %192 = arith.mulf %189, %174 : vector<8x32xf32>
    %193 = arith.mulf %188, %190 : vector<8x32xf32>
    %194 = arith.addf %192, %193 : vector<8x32xf32>
    %195 = math.tanh %194 : vector<8x32xf32>
    %196 = arith.mulf %191, %195 : vector<8x32xf32>
    %c6_i32 = arith.constant 6 : i32
    %197 = vector.broadcast %c6_i32 : i32 to vector<8x32xi32>
    %198 = arith.cmpi sgt, %9, %197 : vector<8x32xi32>
    %199 = arith.select %198, %196, %173 : vector<8x32xi1>, vector<8x32xf32>
    %200 = arith.select %198, %194, %174 : vector<8x32xi1>, vector<8x32xf32>
    %cst_41 = arith.constant 0.000000e+00 : f32
    %201 = vector.broadcast %cst_41 : f32 to vector<8x32xf32>
    %202 = arith.select %198, %196, %201 : vector<8x32xi1>, vector<8x32xf32>
    %203 = arith.addf %177, %202 : vector<8x32xf32>
    %204 = vector.extract_strided_slice %5 {offsets = [56, 0], sizes = [8, 128], strides = [1, 1]} : vector<64x128xf32> to vector<8x128xf32>
    %cst_42 = arith.constant dense<0.000000e+00> : vector<8x128xf32>
    %205 = tpu.matmul %199, %6, %cst_42 {dimension_numbers = #tpu.dot_dimension_numbers<[1], [0], [0], [1], [0, 0, 1, 1], [], []>} : vector<8x32xf32>, vector<32x128xf32>, vector<8x128xf32> -> vector<8x128xf32>
    %206 = arith.addf %204, %205 : vector<8x128xf32>
    %207 = arith.mulf %206, %18 : vector<8x128xf32>
    %208 = math.tanh %207 : vector<8x128xf32>
    %cst_43 = arith.constant 5.000000e-01 : f32
    %209 = vector.broadcast %cst_43 : f32 to vector<8x128xf32>
    %210 = arith.mulf %209, %208 : vector<8x128xf32>
    %cst_44 = arith.constant 5.000000e-01 : f32
    %211 = vector.broadcast %cst_44 : f32 to vector<8x128xf32>
    %212 = arith.addf %210, %211 : vector<8x128xf32>
    %213 = arith.select %15, %208, %212 : vector<8x128xi1>, vector<8x128xf32>
    %214 = vector.extract_strided_slice %213 {offsets = [0, 0], sizes = [8, 32], strides = [1, 1]} : vector<8x128xf32> to vector<8x32xf32>
    %215 = vector.extract_strided_slice %213 {offsets = [0, 32], sizes = [8, 32], strides = [1, 1]} : vector<8x128xf32> to vector<8x32xf32>
    %216 = vector.extract_strided_slice %213 {offsets = [0, 64], sizes = [8, 32], strides = [1, 1]} : vector<8x128xf32> to vector<8x32xf32>
    %217 = vector.extract_strided_slice %213 {offsets = [0, 96], sizes = [8, 32], strides = [1, 1]} : vector<8x128xf32> to vector<8x32xf32>
    %218 = arith.mulf %215, %200 : vector<8x32xf32>
    %219 = arith.mulf %214, %216 : vector<8x32xf32>
    %220 = arith.addf %218, %219 : vector<8x32xf32>
    %221 = math.tanh %220 : vector<8x32xf32>
    %222 = arith.mulf %217, %221 : vector<8x32xf32>
    %c7_i32 = arith.constant 7 : i32
    %223 = vector.broadcast %c7_i32 : i32 to vector<8x32xi32>
    %224 = arith.cmpi sgt, %9, %223 : vector<8x32xi32>
    %cst_45 = arith.constant 0.000000e+00 : f32
    %225 = vector.broadcast %cst_45 : f32 to vector<8x32xf32>
    %226 = arith.select %224, %222, %225 : vector<8x32xi1>, vector<8x32xf32>
    %227 = arith.addf %203, %226 : vector<8x32xf32>
    %cst_46 = arith.constant 1.250000e-01 : f32
    %228 = vector.broadcast %cst_46 : f32 to vector<8x32xf32>
    %229 = arith.mulf %227, %228 : vector<8x32xf32>
    %c0_47 = arith.constant 0 : index
    %c0_48 = arith.constant 0 : index
    %230 = vector.load %arg5[%c0_47, %c0_48] : memref<32x32xf32, #tpu.memory_space<vmem>>, vector<32x32xf32>
    %cst_49 = arith.constant dense<0.000000e+00> : vector<8x32xf32>
    %231 = tpu.matmul %229, %230, %cst_49 {dimension_numbers = #tpu.dot_dimension_numbers<[1], [0], [0], [1], [0, 0, 1, 1], [], []>} : vector<8x32xf32>, vector<32x32xf32>, vector<8x32xf32> -> vector<8x32xf32>
    %c0_50 = arith.constant 0 : index
    %c0_51 = arith.constant 0 : index
    %232 = vector.load %arg6[%c0_50, %c0_51] : memref<1x32xf32, #tpu.memory_space<vmem>>, vector<1x32xf32>
    %233 = vector.broadcast %232 : vector<1x32xf32> to vector<8x32xf32>
    %234 = arith.addf %231, %233 : vector<8x32xf32>
    %cst_52 = arith.constant 0.000000e+00 : f32
    %235 = vector.broadcast %cst_52 : f32 to vector<8x32xf32>
    %236 = arith.cmpf ogt, %234, %235 : vector<8x32xf32>
    %cst_53 = arith.constant 0.00999999977 : f32
    %237 = vector.broadcast %cst_53 : f32 to vector<8x32xf32>
    %238 = arith.mulf %237, %234 : vector<8x32xf32>
    %239 = arith.select %236, %234, %238 : vector<8x32xi1>, vector<8x32xf32>
    %c0_54 = arith.constant 0 : index
    %c0_55 = arith.constant 0 : index
    %240 = vector.load %arg7[%c0_54, %c0_55] : memref<32x2xf32, #tpu.memory_space<vmem>>, vector<32x2xf32>
    %cst_56 = arith.constant dense<0.000000e+00> : vector<8x2xf32>
    %241 = tpu.matmul %239, %240, %cst_56 {dimension_numbers = #tpu.dot_dimension_numbers<[1], [0], [0], [1], [0, 0, 1, 1], [], []>} : vector<8x32xf32>, vector<32x2xf32>, vector<8x2xf32> -> vector<8x2xf32>
    %c0_57 = arith.constant 0 : index
    %c0_58 = arith.constant 0 : index
    %242 = vector.load %arg8[%c0_57, %c0_58] : memref<1x2xf32, #tpu.memory_space<vmem>>, vector<1x2xf32>
    %243 = vector.broadcast %242 : vector<1x2xf32> to vector<8x2xf32>
    %244 = arith.addf %241, %243 : vector<8x2xf32>
    %c0_59 = arith.constant 0 : index
    %c0_60 = arith.constant 0 : index
    %245 = vector.load %arg9[%c0_59, %c0_60] : memref<8x2xf32, #tpu.memory_space<vmem>>, vector<8x2xf32>
    tpu.vector_store %arg9[%c0_59, %c0_60], %244 {strides = array<i32>} : memref<8x2xf32, #tpu.memory_space<vmem>>, vector<8x2xf32>,
    return
  }
}

</mosaic_0001>

<bundles_post_ra>
// kernel: rnn_module_forward.1
= control target key start
LH: loop header
LB: loop body
LE: loop exit
PB: predicated region body
PF: predicated region fallthrough
CT: control target
= control target key end

     0   :  { %v1540_v3 = vmov 0.0|0.0   ;;  %vm1541_vm0 = vmmov 0   ;;  %v1542_v4 = vmov 0.0   ;;  %vm55_vm1 = vcmask 523264   ;;  %s1912_s2 = inlined_call_operand.vmem [shape: f32[64,128], index: 2, kind: input, shape index: {}]   ;;  %s1913_s3 = inlined_call_operand.vmem [shape: f32[32,128], index: 3, kind: input, shape index: {}]   ;;  %s1914_s0 = inlined_call_operand.vmem [shape: f32[64,64], index: 0, kind: input, shape index: {}]   ;;  %s1915_s1 = inlined_call_operand.vmem [shape: s32[8,1], index: 1, kind: input, shape index: {}]   ;;  %s1916_s4 = inlined_call_operand.vmem [shape: f32[1,128], index: 4, kind: input, shape index: {}]   ;;  %s1917_s5 = inlined_call_operand.vmem [shape: f32[32,32], index: 5, kind: input, shape index: {}]   ;;  %s1918_s7 = inlined_call_operand.vmem [shape: f32[32,2], index: 7, kind: input, shape index: {}]   ;;  %s1919_s6 = inlined_call_operand.vmem [shape: f32[1,32], index: 6, kind: input, shape index: {}]   ;;  %s1920_s8 = inlined_call_operand.vmem [shape: f32[1,2], index: 8, kind: input, shape index: {}]   ;;  %s1921_s9 = inlined_call_operand.vmem [shape: f32[8,2], index: 9, kind: output, shape index: {}]  }
   0x1   :  { %v40_v0 = vld [vmem:[%s1912_s2] sm:$0xff]  ;;  %v41_v1 = vld [vmem:[%s1912_s2 + $0x8] sm:$0xff]  ;;  %v42_v2 = vld [vmem:[%s1912_s2 + $0x10] sm:$0xff]  ;;  %1439 = vmatprep.subr.bf16.mxu1 %v1540_v3  ;;  %1321 = vmatprep.mubr.msk.f32.mxu1 %vm1541_vm0, %v1542_v4  ;;  %v1543_v22 = vmov 0   ;;  %v193_v24 = vlaneseq  ;;  %v1544_v33 = vmov 0.5   ;;  %vm199_vm6 = vcmask 261120  }
   0x2   :  { %v1423_v5 = vpack.c.bf16 %v41_v1, %v40_v0  ;;  %v43_v6 = vld [vmem:[%s1912_s2 + $0x18] sm:$0xff]  ;;  %v44_v7 = vld [vmem:[%s1912_s2 + $0x20] sm:$0xff]  ;;  %v45_v9 = vld [vmem:[%s1912_s2 + $0x28] sm:$0xff]  ;;  %1506 = vset.pattern.permute.xlu1 %v1543_v22  ;;  %1507 = vset.pattern.permute.xlu0 %v1543_v22  ;;  %vm1193_vm15 = vcmask 15360  }
   0x3   :  { %v1427_v8 = vpack.c.bf16 %v43_v6, %v42_v2  ;;  %v185_v10 = vld [vmem:[%s1913_s3] sm:$0xff]  ;;  %v186_v11 = vld [vmem:[%s1913_s3 + $0x8] sm:$0xff]  ;;  %v187_v14 = vld [vmem:[%s1913_s3 + $0x10] sm:$0xff]  ;;  %v1431_v16 = vpack.c.bf16 %v45_v9, %v44_v7  ;;  %v194_v25 = vand.u32 127, %v193_v24 }
   0x4   :  { %1424 = vmatprep.subr.bf16.mxu0 %v1423_v5  ;;  %v1624_v12 = vpack.c.bf16 %v186_v11, %v185_v10  ;;  %v32_v13 = vld [vmem:[%s1914_s0] sm:$0xff]  ;;  %v188_v15 = vld [vmem:[%s1913_s3 + $0x18] sm:$0xff]  ;;  %v46_v18 = vld [vmem:[%s1912_s2 + $0x30] sm:$0xff] }
   0x5   :  { %1426 = vmatpush3.bf16.msra.mxu0 %v1423_v5  ;;  %1301 = vmatprep.mubr.msk.f32.mxu0 %vm55_vm1, %v32_v13  ;;  %v1637_v17 = vpack.c.bf16 %v188_v15, %v187_v14  ;;  %v47_v19 = vld [vmem:[%s1912_s2 + $0x38] sm:$0xff]  ;;  %v33_v21 = vld [vmem:[%s1914_s0 + $0x8] sm:$0xff]  ;;  %v189_v23 = vld [vmem:[%s1915_s1] sm:$0xff]  ;;  %vm195_vm2 = vcmp.ge.s32.totalorder %v194_v25, 64  ;;  %vm196_vm3 = vcmp.lt.s32.totalorder %v194_v25, 96  ;;  %s1545_s1 = smov 64  }
   0x6   :  { %1428 = vmatprep.subr.bf16.mxu0 %v1427_v8  ;;  %1441 = vmatpush3.bf16.msra.mxu1 %v1624_v12  ;;  %v1435_v20 = vpack.c.bf16 %v47_v19, %v46_v18  ;;  %v1670_v28 = vld [vmem:[%s1916_s4] ss:$0 sm:$0xff]  ;;  %vm1672_vm4 = vmand %vm195_vm2, %vm196_vm3  ;;  %s1546_s4 = smov 32   ;;  %v34_v5 = vld [vmem:[%s1914_s0 + $0x10] sm:$0xff] }
   0x7   :  { %1442 = vmatprep.subr.bf16.mxu1 %v1540_v3  ;;  %191 = vperm.xlu1 %1506, %v189_v23   ;;  %v1679_v34 = vsel %vm1672_vm4, 1.0, %v1544_v33  ;;  %v35_v6 = vld [vmem:[%s1914_s0 + $0x18] sm:$0xff]  ;;  %v36_v33 = vld [vmem:[%s1914_s0 + $0x20] sm:$0xff]  ;;  %v1021_v30 = vld [vmem:[%s1917_s5 + $0x8] sm:$0xff] }
   0x9   :  { %1430 = vmatpush3.bf16.msra.mxu0 %v1427_v8 }
   0xa   :  { %1432 = vmatprep.subr.bf16.mxu0 %v1431_v16  ;;  %1444 = vmatpush3.bf16.msra.mxu1 %v1637_v17 }
   0xb   :  { %1445 = vmatprep.subr.bf16.mxu1 %v1540_v3 }
   0xd   :  { %1434 = vmatpush3.bf16.msra.mxu0 %v1431_v16  ;;  %1322 = vmatmul.mubr.f32.vlgmr.msra.gmra.mrb[0].mxu1 %v1542_v4 }
   0xe   :  { %1436 = vmatprep.subr.bf16.mxu0 %v1435_v20  ;;  %1447 = vmatpush3.bf16.msra.mxu1 %v1624_v12 }
   0xf   :  { %1448 = vmatprep.subr.bf16.mxu1 %v1540_v3  ;;  %1332 = vmatprep.mubr.msk.f32.mxu1 %vm1541_vm0, %v1542_v4 }
  0x11   :  { %1438 = vmatpush3.bf16.msra.mxu0 %v1435_v20 }
  0x12   :  { %1450 = vmatpush3.bf16.msra.mxu1 %v1637_v17  ;;  %1457 = vmatprep.subr.bf16.mxu0 %v1540_v3 }
  0x13   :  { %1451 = vmatprep.subr.bf16.mxu1 %v1540_v3 }
  0x14   :  { %1302 = vmatmul.mubr.msk.f32.vlgmr.msra.gmra.mrb[0].mxu0 %vm55_vm1, %v33_v21 }
  0x15   :  { %1459 = vmatpush3.bf16.msra.mxu0 %v1624_v12  ;;  %1304 = vmatprep.mubr.msk.f32.mxu0 %vm55_vm1, %v34_v5 }
  0x16   :  { %1460 = vmatprep.subr.bf16.mxu0 %v1540_v3 }
  0x18   :  { %1305 = vmatmul.mubr.msk.f32.gmra.mrb[2].mxu0 %vm55_vm1, %v35_v6 }
  0x19   :  { %1462 = vmatpush3.bf16.msra.mxu0 %v1637_v17  ;;  %1307 = vmatprep.mubr.msk.f32.mxu0 %vm55_vm1, %v36_v33 }
  0x1a   :  { %1469 = vmatprep.subr.bf16.mxu0 %v1540_v3 }
  0x86   :  { %v1687_v47 = vpop.permute.xlu1 %191 }
  0x87   :  { %vm296_vm5 = vcmp.gt.s32.totalorder %v1687_v47, 0  ;;  %vm398_vm7 = vcmp.gt.s32.totalorder %v1687_v47, 1  ;;  %vm501_vm8 = vcmp.gt.s32.totalorder %v1687_v47, 2  ;;  %vm604_vm9 = vcmp.gt.s32.totalorder %v1687_v47, 3 }
  0x88   :  { %vm707_vm10 = vcmp.gt.s32.totalorder %v1687_v47, 4  ;;  %vm810_vm11 = vcmp.gt.s32.totalorder %v1687_v47, 5  ;;  %vm913_vm12 = vcmp.gt.s32.totalorder %v1687_v47, 6  ;;  %vm1016_vm13 = vcmp.gt.s32.totalorder %v1687_v47, 7  ;;  %v1215_v47 = vld [vmem:[%s1919_s6] ss:$0 sm:$0xff] }
  0xe0   :  { %v269_v26 = vpop.f32.mrb[0].mxu1 }
  0xe1   :  { %v1323_v27 = vpop.f32.mrb[1].mxu1 }
  0xe7   :  { %v1303_v29 = vpop.f32.mrb[0].mxu0 }
  0xe8   :  { %v146_v31 = vpop.f32.mrb[1].mxu0  ;;  %v152_v52 = vadd.f32 %v1303_v29, %v1670_v28 }
  0xe9   :  { %v147_v32 = vadd.f32 %v1670_v28, %v146_v31 }
  0xeb   :  { %v273_v35 = vadd.f32 %v269_v26, %v147_v32  ;;  %v1306_v11 = vpop.f32.mrb[2].mxu0 }
  0xec   :  { %v156_v13 = vpop.f32.mrb[3].mxu0 }
  0xed   :  { %v274_v36 = vmul.f32 %v273_v35, %v1679_v34  ;;  %v157_v15 = vadd.f32 %v1670_v28, %v156_v13  ;;  %v37_v35 = vld [vmem:[%s1914_s0 + $0x28] sm:$0xff] }
  0xee   :  { %1308 = vmatmul.mubr.msk.f32.gmra.mrb[4].mxu0 %vm55_vm1, %v37_v35 }
  0xef   :  { %1508 = vtanh.f32 %v274_v36  ;;  %v38_v36 = vld [vmem:[%s1914_s0 + $0x30] sm:$0xff] }
  0xf0   :  { %1310 = vmatprep.mubr.msk.f32.mxu0 %vm55_vm1, %v38_v36 }
  0xf9   :  { %v1509_v37 = vpop.eup %1508 }
  0xfa   :  { %v276_v38 = vmul.f32 0.5, %v1509_v37 }
  0xfc   :  { %v277_v39 = vadd.f32 0.5, %v276_v38 }
  0xfe   :  { %v278_v40 = vsel %vm1672_vm4, %v1509_v37, %v277_v39  ;;  %v39_v37 = vld [vmem:[%s1914_s0 + $0x38] sm:$0xff] }
  0xff   :  { %281 = vrot.lane.b32.xlu0 %v278_v40, %s1545_s1  ;;  %v279_v43 = vmul.f32 0.0, %v278_v40  ;;  %1311 = vmatmul.mubr.msk.f32.gmra.mrb[6].mxu0 %vm55_vm1, %v39_v37 }
 0x100   :  { %1354 = vmatprep.mubr.msk.f32.mxu0 %vm1541_vm0, %v1542_v4 }
 0x171   :  { %v282_v41 = vpop.permute.xlu0 %281 }
 0x172   :  { %v284_v42 = vmul.f32 %v282_v41, %v278_v40 }
 0x174   :  { %286 = vrot.lane.b32.xlu0 %v284_v42, %s1546_s4 }
 0x1e6   :  { %v287_v44 = vpop.permute.xlu0 %286 }
 0x1e7   :  { %v289_v45 = vadd.f32 %v287_v44, %v279_v43 }
 0x1e9   :  { %1510 = vtanh.f32 %v289_v45  ;;  %v298_v63 = vsel %vm296_vm5, %v289_v45, 0.0 }
 0x1f3   :  { %v1511_v46 = vpop.eup %1510 }
 0x1f4   :  { %292 = vrot.lane.b32.xlu1 %v1511_v46, %s1545_s1  ;;  %v1768_v46 = vpop.f32.mrb[4].mxu0 }
 0x266   :  { %v293_v48 = vpop.permute.xlu1 %292 }
 0x267   :  { %v295_v49 = vmul.f32 %v293_v48, %v278_v40  ;;  %v166_v48 = vpop.f32.mrb[5].mxu0 }
 0x268   :  { %v167_v13 = vadd.f32 %v1670_v28, %v166_v48 }
 0x269   :  { %v1692_v50 = vsel %vm296_vm5, %v295_v49, 0.0  ;;  %v1770_v49 = vpop.f32.mrb[6].mxu0 }
 0x26a   :  { %301 = vrot.lane.b32.xlu0 %v1692_v50, %s1546_s4 }
 0x2dc   :  { %v302_v51 = vpop.permute.xlu0 %301 }
 0x2dd   :  { %1333 = vmatmul.mubr.msk.f32.vlgmr.msra.gmra.mrb[2].mxu1 %vm199_vm6, %v302_v51  ;;  %v1772_v51 = vpop.f32.mrb[7].mxu0 }
 0x2de   :  { %1453 = vmatpush3.bf16.msra.mxu1 %v1624_v12  ;;  %1343 = vmatprep.mubr.msk.f32.mxu1 %vm1541_vm0, %v1542_v4 }
 0x2df   :  { %1454 = vmatprep.subr.bf16.mxu1 %v1540_v3 }
 0x2e2   :  { %1456 = vmatpush3.bf16.msra.mxu1 %v1637_v17 }
 0x2e3   :  { %1463 = vmatprep.subr.bf16.mxu1 %v1540_v3 }
 0x3b0   :  { %v371_v53 = vpop.f32.mrb[2].mxu1 }
 0x3b1   :  { %v375_v54 = vadd.f32 %v371_v53, %v152_v52  ;;  %v1334_v55 = vpop.f32.mrb[3].mxu1 }
 0x3b3   :  { %v376_v56 = vmul.f32 %v375_v54, %v1679_v34 }
 0x3b5   :  { %1512 = vtanh.f32 %v376_v56 }
 0x3bf   :  { %v1513_v57 = vpop.eup %1512 }
 0x3c0   :  { %v378_v58 = vmul.f32 0.5, %v1513_v57 }
 0x3c2   :  { %v379_v59 = vadd.f32 0.5, %v378_v58 }
 0x3c4   :  { %v380_v60 = vsel %vm1672_vm4, %v1513_v57, %v379_v59 }
 0x3c5   :  { %383 = vrot.lane.b32.xlu1 %v380_v60, %s1545_s1  ;;  %v381_v0 = vmul.f32 %v380_v60, %v298_v63 }
 0x437   :  { %v384_v61 = vpop.permute.xlu1 %383 }
 0x438   :  { %v386_v62 = vmul.f32 %v384_v61, %v380_v60 }
 0x43a   :  { %388 = vrot.lane.b32.xlu0 %v386_v62, %s1546_s4 }
 0x4ac   :  { %v389_v1 = vpop.permute.xlu0 %388 }
 0x4ad   :  { %v391_v2 = vadd.f32 %v389_v1, %v381_v0 }
 0x4af   :  { %1514 = vtanh.f32 %v391_v2  ;;  %v400_v27 = vsel %vm398_vm7, %v391_v2, %v298_v63 }
 0x4b9   :  { %v1515_v7 = vpop.eup %1514 }
 0x4ba   :  { %394 = vrot.lane.b32.xlu1 %v1515_v7, %s1545_s1 }
 0x52c   :  { %v395_v8 = vpop.permute.xlu1 %394 }
 0x52d   :  { %v397_v9 = vmul.f32 %v395_v8, %v380_v60 }
 0x52f   :  { %v399_v10 = vsel %vm398_vm7, %v397_v9, %v1692_v50  ;;  %v401_v39 = vsel %vm398_vm7, %v397_v9, 0.0 }
 0x530   :  { %404 = vrot.lane.b32.xlu0 %v399_v10, %s1546_s4  ;;  %v402_v42 = vadd.f32 %v401_v39, %v1692_v50  ;;  %v162_v50 = vadd.f32 %v1306_v11, %v1670_v28  ;;  %v172_v39 = vadd.f32 %v1768_v46, %v1670_v28 }
 0x5a2   :  { %v405_v14 = vpop.permute.xlu0 %404 }
 0x5a3   :  { %1344 = vmatmul.mubr.msk.f32.vlgmr.msra.gmra.mrb[4].mxu1 %vm199_vm6, %v405_v14 }
 0x5a4   :  { %1465 = vmatpush3.bf16.msra.mxu1 %v1624_v12  ;;  %1365 = vmatprep.mubr.msk.f32.mxu1 %vm1541_vm0, %v1542_v4 }
 0x5a5   :  { %1466 = vmatprep.subr.bf16.mxu1 %v1540_v3 }
 0x5a8   :  { %1468 = vmatpush3.bf16.msra.mxu1 %v1637_v17 }
 0x5a9   :  { %1475 = vmatprep.subr.bf16.mxu1 %v1540_v3 }
 0x676   :  { %v474_v16 = vpop.f32.mrb[4].mxu1 }
 0x677   :  { %v478_v18 = vadd.f32 %v474_v16, %v157_v15  ;;  %v1345_v19 = vpop.f32.mrb[5].mxu1 }
 0x679   :  { %v479_v20 = vmul.f32 %v478_v18, %v1679_v34 }
 0x67b   :  { %1516 = vtanh.f32 %v479_v20 }
 0x685   :  { %v1517_v21 = vpop.eup %1516 }
 0x686   :  { %v481_v22 = vmul.f32 0.5, %v1517_v21 }
 0x688   :  { %v482_v23 = vadd.f32 0.5, %v481_v22 }
 0x68a   :  { %v483_v24 = vsel %vm1672_vm4, %v1517_v21, %v482_v23 }
 0x68b   :  { %486 = vrot.lane.b32.xlu1 %v483_v24, %s1545_s1  ;;  %v484_v29 = vmul.f32 %v483_v24, %v400_v27 }
 0x6fd   :  { %v487_v25 = vpop.permute.xlu1 %486 }
 0x6fe   :  { %v489_v26 = vmul.f32 %v487_v25, %v483_v24 }
 0x700   :  { %491 = vrot.lane.b32.xlu0 %v489_v26, %s1546_s4 }
 0x772   :  { %v492_v31 = vpop.permute.xlu0 %491 }
 0x773   :  { %v494_v32 = vadd.f32 %v492_v31, %v484_v29 }
 0x775   :  { %1518 = vtanh.f32 %v494_v32  ;;  %v503_v63 = vsel %vm501_vm8, %v494_v32, %v400_v27 }
 0x77f   :  { %v1519_v38 = vpop.eup %1518 }
 0x780   :  { %497 = vrot.lane.b32.xlu1 %v1519_v38, %s1545_s1 }
 0x7f2   :  { %v498_v40 = vpop.permute.xlu1 %497 }
 0x7f3   :  { %v500_v41 = vmul.f32 %v498_v40, %v483_v24 }
 0x7f5   :  { %v504_v43 = vsel %vm501_vm8, %v500_v41, 0.0  ;;  %v502_v44 = vsel %vm501_vm8, %v500_v41, %v399_v10 }
 0x7f6   :  { %v505_v45 = vadd.f32 %v504_v43, %v402_v42  ;;  %507 = vrot.lane.b32.xlu0 %v502_v44, %s1546_s4 }
 0x868   :  { %v508_v52 = vpop.permute.xlu0 %507 }
 0x869   :  { %1355 = vmatmul.mubr.msk.f32.vlgmr.msra.gmra.mrb[8].mxu0 %vm199_vm6, %v508_v52 }
 0x86a   :  { %1471 = vmatpush3.bf16.msra.mxu0 %v1624_v12  ;;  %1376 = vmatprep.mubr.msk.f32.mxu0 %vm1541_vm0, %v1542_v4 }
 0x86b   :  { %1472 = vmatprep.subr.bf16.mxu0 %v1540_v3 }
 0x86e   :  { %1474 = vmatpush3.bf16.msra.mxu0 %v1637_v17 }
 0x86f   :  { %1481 = vmatprep.subr.bf16.mxu0 %v1540_v3 }
 0x93c   :  { %v577_v53 = vpop.f32.mrb[8].mxu0 }
 0x93d   :  { %v581_v54 = vadd.f32 %v577_v53, %v162_v50  ;;  %v1356_v55 = vpop.f32.mrb[9].mxu0 }
 0x93f   :  { %v582_v56 = vmul.f32 %v581_v54, %v1679_v34 }
 0x941   :  { %1520 = vtanh.f32 %v582_v56 }
 0x94b   :  { %v1521_v57 = vpop.eup %1520 }
 0x94c   :  { %v584_v58 = vmul.f32 0.5, %v1521_v57 }
 0x94e   :  { %v585_v59 = vadd.f32 0.5, %v584_v58 }
 0x950   :  { %v586_v60 = vsel %vm1672_vm4, %v1521_v57, %v585_v59 }
 0x951   :  { %589 = vrot.lane.b32.xlu1 %v586_v60, %s1545_s1  ;;  %v587_v0 = vmul.f32 %v586_v60, %v503_v63 }
 0x9c3   :  { %v590_v61 = vpop.permute.xlu1 %589 }
 0x9c4   :  { %v592_v62 = vmul.f32 %v590_v61, %v586_v60 }
 0x9c6   :  { %594 = vrot.lane.b32.xlu0 %v592_v62, %s1546_s4  ;;  %v177_v62 = vadd.f32 %v1670_v28, %v1772_v51 }
 0xa38   :  { %v595_v1 = vpop.permute.xlu0 %594 }
 0xa39   :  { %v597_v2 = vadd.f32 %v595_v1, %v587_v0 }
 0xa3b   :  { %1522 = vtanh.f32 %v597_v2  ;;  %v606_v25 = vsel %vm604_vm9, %v597_v2, %v503_v63 }
 0xa45   :  { %v1523_v5 = vpop.eup %1522 }
 0xa46   :  { %600 = vrot.lane.b32.xlu1 %v1523_v5, %s1545_s1 }
 0xab8   :  { %v601_v6 = vpop.permute.xlu1 %600 }
 0xab9   :  { %v603_v7 = vmul.f32 %v601_v6, %v586_v60 }
 0xabb   :  { %v607_v8 = vsel %vm604_vm9, %v603_v7, 0.0  ;;  %v605_v9 = vsel %vm604_vm9, %v603_v7, %v502_v44 }
 0xabc   :  { %v608_v10 = vadd.f32 %v607_v8, %v505_v45  ;;  %610 = vrot.lane.b32.xlu0 %v605_v9, %s1546_s4 }
 0xb2e   :  { %v611_v11 = vpop.permute.xlu0 %610 }
 0xb2f   :  { %1366 = vmatmul.mubr.msk.f32.vlgmr.msra.gmra.mrb[6].mxu1 %vm199_vm6, %v611_v11 }
 0xb30   :  { %1477 = vmatpush3.bf16.msra.mxu1 %v1624_v12  ;;  %1387 = vmatprep.mubr.msk.f32.mxu1 %vm1541_vm0, %v1542_v4 }
 0xb31   :  { %1478 = vmatprep.subr.bf16.mxu1 %v1540_v3 }
 0xb34   :  { %1480 = vmatpush3.bf16.msra.mxu1 %v1637_v17 }
 0xb35   :  { %1487 = vmatprep.subr.bf16.mxu1 %v1540_v3 }
 0xc02   :  { %v680_v14 = vpop.f32.mrb[6].mxu1 }
 0xc03   :  { %v684_v15 = vadd.f32 %v680_v14, %v167_v13  ;;  %v1367_v16 = vpop.f32.mrb[7].mxu1 }
 0xc05   :  { %v685_v18 = vmul.f32 %v684_v15, %v1679_v34 }
 0xc07   :  { %1524 = vtanh.f32 %v685_v18 }
 0xc11   :  { %v1525_v19 = vpop.eup %1524 }
 0xc12   :  { %v687_v20 = vmul.f32 0.5, %v1525_v19 }
 0xc14   :  { %v688_v21 = vadd.f32 0.5, %v687_v20 }
 0xc16   :  { %v689_v22 = vsel %vm1672_vm4, %v1525_v19, %v688_v21 }
 0xc17   :  { %692 = vrot.lane.b32.xlu1 %v689_v22, %s1545_s1  ;;  %v690_v26 = vmul.f32 %v689_v22, %v606_v25 }
 0xc89   :  { %v693_v23 = vpop.permute.xlu1 %692 }
 0xc8a   :  { %v695_v24 = vmul.f32 %v693_v23, %v689_v22  ;;  %v182_v23 = vadd.f32 %v1770_v49, %v1670_v28 }
 0xc8c   :  { %697 = vrot.lane.b32.xlu0 %v695_v24, %s1546_s4 }
 0xcfe   :  { %v698_v27 = vpop.permute.xlu0 %697 }
 0xcff   :  { %v700_v29 = vadd.f32 %v698_v27, %v690_v26 }
 0xd01   :  { %1526 = vtanh.f32 %v700_v29  ;;  %v709_v46 = vsel %vm707_vm10, %v700_v29, %v606_v25 }
 0xd0b   :  { %v1527_v31 = vpop.eup %1526 }
 0xd0c   :  { %703 = vrot.lane.b32.xlu1 %v1527_v31, %s1545_s1 }
 0xd7e   :  { %v704_v32 = vpop.permute.xlu1 %703 }
 0xd7f   :  { %v706_v33 = vmul.f32 %v704_v32, %v689_v22 }
 0xd81   :  { %v710_v35 = vsel %vm707_vm10, %v706_v33, 0.0  ;;  %v708_v36 = vsel %vm707_vm10, %v706_v33, %v605_v9 }
 0xd82   :  { %v711_v37 = vadd.f32 %v710_v35, %v608_v10  ;;  %713 = vrot.lane.b32.xlu0 %v708_v36, %s1546_s4 }
 0xdf4   :  { %v714_v38 = vpop.permute.xlu0 %713 }
 0xdf5   :  { %1377 = vmatmul.mubr.msk.f32.vlgmr.msra.gmra.mrb[10].mxu0 %vm199_vm6, %v714_v38  ;;  %v1022_v38 = vld [vmem:[%s1917_s5 + $0x10] sm:$0xff] }
 0xdf6   :  { %1483 = vmatpush3.bf16.msra.mxu0 %v1624_v12  ;;  %1398 = vmatprep.mubr.msk.f32.mxu0 %vm1541_vm0, %v1542_v4 }
 0xdf7   :  { %1484 = vmatprep.subr.bf16.mxu0 %v1540_v3 }
 0xdfa   :  { %1486 = vmatpush3.bf16.msra.mxu0 %v1637_v17 }
 0xdfb   :  { %1493 = vmatprep.subr.bf16.mxu0 %v1540_v3 }
 0xec8   :  { %v783_v40 = vpop.f32.mrb[10].mxu0 }
 0xec9   :  { %v787_v41 = vadd.f32 %v783_v40, %v172_v39  ;;  %v1378_v42 = vpop.f32.mrb[11].mxu0  ;;  %v1023_v40 = vld [vmem:[%s1917_s5 + $0x18] sm:$0xff] }
 0xecb   :  { %v788_v43 = vmul.f32 %v787_v41, %v1679_v34  ;;  %v1491_v41 = vpack.c.bf16 %v1023_v40, %v1022_v38 }
 0xecd   :  { %1528 = vtanh.f32 %v788_v43  ;;  %v1109_v43 = vld [vmem:[%s1918_s7] sm:$0xff] }
 0xed7   :  { %v1529_v44 = vpop.eup %1528 }
 0xed8   :  { %v790_v12 = vmul.f32 0.5, %v1529_v44 }
 0xeda   :  { %v791_v45 = vadd.f32 0.5, %v790_v12 }
 0xedc   :  { %v792_v48 = vsel %vm1672_vm4, %v1529_v44, %v791_v45  ;;  %v1110_v44 = vld [vmem:[%s1918_s7 + $0x8] sm:$0xff] }
 0xedd   :  { %795 = vrot.lane.b32.xlu1 %v792_v48, %s1545_s1  ;;  %v793_v50 = vmul.f32 %v792_v48, %v709_v46  ;;  %v1494_v12 = vpack.c.bf16 %v1110_v44, %v1109_v43 }
 0xf4f   :  { %v796_v17 = vpop.permute.xlu1 %795 }
 0xf50   :  { %v798_v52 = vmul.f32 %v796_v17, %v792_v48 }
 0xf52   :  { %800 = vrot.lane.b32.xlu0 %v798_v52, %s1546_s4 }
 0xfc4   :  { %v801_v53 = vpop.permute.xlu0 %800 }
 0xfc5   :  { %v803_v54 = vadd.f32 %v801_v53, %v793_v50  ;;  %v1111_v53 = vld [vmem:[%s1918_s7 + $0x10] sm:$0xff] }
 0xfc7   :  { %1530 = vtanh.f32 %v803_v54  ;;  %v812_v51 = vsel %vm810_vm11, %v803_v54, %v709_v46  ;;  %v1112_v54 = vld [vmem:[%s1918_s7 + $0x18] sm:$0xff] }
 0xfd1   :  { %v1531_v55 = vpop.eup %1530 }
 0xfd2   :  { %806 = vrot.lane.b32.xlu1 %v1531_v55, %s1545_s1 }
0x1044   :  { %v807_v56 = vpop.permute.xlu1 %806 }
0x1045   :  { %v809_v57 = vmul.f32 %v807_v56, %v792_v48 }
0x1047   :  { %v813_v58 = vsel %vm810_vm11, %v809_v57, 0.0  ;;  %v811_v59 = vsel %vm810_vm11, %v809_v57, %v708_v36 }
0x1048   :  { %v814_v60 = vadd.f32 %v813_v58, %v711_v37  ;;  %816 = vrot.lane.b32.xlu0 %v811_v59, %s1546_s4 }
0x10ba   :  { %v817_v61 = vpop.permute.xlu0 %816 }
0x10bb   :  { %1388 = vmatmul.mubr.msk.f32.vlgmr.msra.gmra.mrb[8].mxu1 %vm199_vm6, %v817_v61 }
0x10bc   :  { %1409 = vmatprep.mubr.msk.f32.mxu1 %vm1541_vm0, %v1542_v4 }
0x118e   :  { %v886_v63 = vpop.f32.mrb[8].mxu1 }
0x118f   :  { %v890_v0 = vadd.f32 %v886_v63, %v177_v62  ;;  %v1389_v1 = vpop.f32.mrb[9].mxu1 }
0x1191   :  { %v891_v2 = vmul.f32 %v890_v0, %v1679_v34 }
0x1193   :  { %1532 = vtanh.f32 %v891_v2 }
0x119d   :  { %v1533_v5 = vpop.eup %1532 }
0x119e   :  { %v893_v6 = vmul.f32 0.5, %v1533_v5 }
0x11a0   :  { %v894_v7 = vadd.f32 0.5, %v893_v6 }
0x11a2   :  { %v895_v8 = vsel %vm1672_vm4, %v1533_v5, %v894_v7 }
0x11a3   :  { %898 = vrot.lane.b32.xlu1 %v895_v8, %s1545_s1  ;;  %v896_v11 = vmul.f32 %v895_v8, %v812_v51 }
0x1215   :  { %v899_v9 = vpop.permute.xlu1 %898 }
0x1216   :  { %v901_v10 = vmul.f32 %v899_v9, %v895_v8 }
0x1218   :  { %903 = vrot.lane.b32.xlu0 %v901_v10, %s1546_s4 }
0x128a   :  { %v904_v13 = vpop.permute.xlu0 %903 }
0x128b   :  { %v906_v14 = vadd.f32 %v904_v13, %v896_v11 }
0x128d   :  { %1534 = vtanh.f32 %v906_v14 }
0x1297   :  { %v1535_v15 = vpop.eup %1534 }
0x1298   :  { %909 = vrot.lane.b32.xlu1 %v1535_v15, %s1545_s1 }
0x130a   :  { %v910_v16 = vpop.permute.xlu1 %909 }
0x130b   :  { %v912_v18 = vmul.f32 %v910_v16, %v895_v8 }
0x130d   :  { %v916_v19 = vsel %vm913_vm12, %v912_v18, 0.0  ;;  %v914_v20 = vsel %vm913_vm12, %v912_v18, %v811_v59 }
0x130e   :  { %v917_v21 = vadd.f32 %v916_v19, %v814_v60  ;;  %919 = vrot.lane.b32.xlu0 %v914_v20, %s1546_s4  ;;  %v1217_v60 = vld [vmem:[%s1920_s8] ss:$0 sm:$0xff] }
0x1380   :  { %v920_v22 = vpop.permute.xlu0 %919 }
0x1381   :  { %1399 = vmatmul.mubr.msk.f32.vlgmr.msra.gmra.mrb[12].mxu0 %vm199_vm6, %v920_v22 }
0x1382   :  { %1420 = vmatprep.mubr.msk.f32.mxu0 %vm1541_vm0, %v1542_v4  ;;  %v915_v4 = vsel %vm913_vm12, %v906_v14, %v812_v51  ;;  %1495 = vmatpush3.bf16.msra.mxu0 %v1494_v12 }
0x1383   :  { %1496 = vmatprep.subr.bf16.mxu0 %v1540_v3 }
0x1454   :  { %v989_v24 = vpop.f32.mrb[12].mxu0 }
0x1455   :  { %v993_v25 = vadd.f32 %v989_v24, %v182_v23  ;;  %v1400_v26 = vpop.f32.mrb[13].mxu0 }
0x1457   :  { %v994_v27 = vmul.f32 %v993_v25, %v1679_v34  ;;  %v1020_v34 = vld [vmem:[%s1917_s5] sm:$0xff] }
0x1458   :  { %v1488_v39 = vpack.c.bf16 %v1021_v30, %v1020_v34 }
0x1459   :  { %1536 = vtanh.f32 %v994_v27 }
0x145a   :  { %1489 = vmatpush3.bf16.msra.mxu1 %v1488_v39 }
0x145b   :  { %1490 = vmatprep.subr.bf16.mxu1 %v1540_v3  ;;  %v1497_v3 = vpack.c.bf16 %v1112_v54, %v1111_v53 }
0x145d   :  { %1498 = vmatpush3.bf16.msra.mxu0 %v1497_v3 }
0x145e   :  { %1492 = vmatpush3.bf16.msra.mxu1 %v1491_v41 }
0x1463   :  { %v1537_v29 = vpop.eup %1536 }
0x1464   :  { %v996_v31 = vmul.f32 0.5, %v1537_v29 }
0x1466   :  { %v997_v32 = vadd.f32 0.5, %v996_v31 }
0x1468   :  { %v998_v33 = vsel %vm1672_vm4, %v1537_v29, %v997_v32 }
0x1469   :  { %1001 = vrot.lane.b32.xlu1 %v998_v33, %s1545_s1  ;;  %v999_v28 = vmul.f32 %v998_v33, %v915_v4 }
0x14db   :  { %v1002_v35 = vpop.permute.xlu1 %1001 }
0x14dc   :  { %v1004_v36 = vmul.f32 %v1002_v35, %v998_v33 }
0x14de   :  { %1006 = vrot.lane.b32.xlu0 %v1004_v36, %s1546_s4 }
0x1550   :  { %v1007_v49 = vpop.permute.xlu0 %1006 }
0x1551   :  { %v1009_v37 = vadd.f32 %v1007_v49, %v999_v28 }
0x1553   :  { %1538 = vtanh.f32 %v1009_v37 }
0x155d   :  { %v1539_v42 = vpop.eup %1538 }
0x155e   :  { %1012 = vrot.lane.b32.xlu1 %v1539_v42, %s1545_s1 }
0x15d0   :  { %v1013_v45 = vpop.permute.xlu1 %1012 }
0x15d1   :  { %v1015_v48 = vmul.f32 %v1013_v45, %v998_v33 }
0x15d3   :  { %v1017_v17 = vsel %vm1016_vm13, %v1015_v48, 0.0 }
0x15d4   :  { %v1018_v52 = vadd.f32 %v1017_v17, %v917_v21 }
0x15d6   :  { %v1019_v46 = vmul.f32 0.125, %v1018_v52 }
0x15d8   :  { %1032 = vrot.lane.b32.xlu0 %v1019_v46, %s1546_s4 }
0x164a   :  { %v1033_v50 = vpop.permute.xlu0 %1032 }
0x164b   :  { %1410 = vmatmul.mubr.msk.f32.vlgmr.msra.gmra.mrb[10].mxu1 %vm199_vm6, %v1033_v50 }
0x171e   :  { %v1102_v55 = vpop.f32.mrb[10].mxu1 }
0x171f   :  { %v1103_v56 = vadd.f32 %v1215_v47, %v1102_v55  ;;  %v1411_v57 = vpop.f32.mrb[11].mxu1 }
0x1721   :  { %vm1106_vm14 = vcmp.gt.f32.partialorder %v1103_v56, 0.0  ;;  %v1107_v58 = vmul.f32 0.01, %v1103_v56 }
0x1723   :  { %v1108_v59 = vsel %vm1106_vm14, %v1103_v56, %v1107_v58 }
0x1724   :  { %1421 = vmatmul.mubr.msk.f32.vlgmr.msra.gmra.mrb[14].mxu0 %vm199_vm6, %v1108_v59 }
0x17f7   :  { %v1189_v61 = vpop.f32.mrb[14].mxu0 }
0x17f8   :  { %v1190_v62 = vadd.f32 %v1217_v60, %v1189_v61  ;;  %v1422_v63 = vpop.f32.mrb[15].mxu0 }
0x17fa   :  { %1194 = vst.msk [vmem:[%s1921_s9] sm:$0xff] %vm1193_vm15, %v1190_v62 }

</bundles_post_ra>
